<compile_context>
chip_gen: v6e
topology: v6e:2x2x1
jax: 0.10.0
libtpu: 0.0.40
codegen_flags: <defaults>
</compile_context>

<pallas_src>
import functools

import jax
import jax.numpy as jnp
from jax import lax
from jax.experimental import pallas as pl
from jax.experimental.pallas import tpu as pltpu


_LANES_PER_ROW = 3 * 128          # 384: lane-dense and a whole number of triplets
_PALLAS_MIN_PARTICLES = 1024      # below this, fused XLA elementwise is faster


def _transition_mean_kernel(x_ref, o_ref, *, dt, inv_m):
    # x_ref / o_ref: (tile_r, 384) blocks.  Each row is 128 interleaved
    # [f, x, xdot] triplets, so the neighbor a lane needs is at lane j+1
    # (velocity, for position slots) or lane j-2 (force, for velocity slots).
    x = x_ref[...]                                               # one dense load
    lane3 = lax.broadcasted_iota(jnp.int32, x.shape, 1) % 3      # 0=f, 1=x, 2=xdot slot

    nxt = jnp.roll(x, -1, axis=1)    # nxt[:, j] = x[:, j+1]  (velocity at position slots)
    prv = jnp.roll(x, 2, axis=1)     # prv[:, j] = x[:, j-2]  (force at velocity slots)
    # Wrap-around lanes only land where coeff == 0 (row width is a multiple of 3).

    shifted = jnp.where(lane3 == 1, nxt, prv)
    coeff = jnp.where(lane3 == 1, jnp.float32(dt),
                      jnp.where(lane3 == 2, jnp.float32(dt * inv_m), jnp.float32(0.0)))

    o_ref[...] = x + coeff * shifted                             # one dense store


def _choose_tile_rows(num_rows, max_tile_rows=512):
    """Block rows: multiple of 8, big payload, but keep >=~4 grid steps (v7x has 2 TCs)."""
    if num_rows <= 8:
        return num_rows                       # single full-extent block is always legal
    target = -(-num_rows // 4)                # ceil(num_rows / 4)
    target = ((target + 7) // 8) * 8          # round up to sublane multiple
    return max(8, min(max_tile_rows, target))


def transition_mean_pallas(prev_latent, *, m, dt, max_tile_rows=512):
    """prev_latent: (B, P, 3) float32 -> mean: (B, P, 3) float32 (Pallas path).

    Requires B*P to be a multiple of 128 (so the flat buffer reshapes, without
    any data movement, into full lane-dense rows of 128 triplets).
    """
    B, P, D = prev_latent.shape
    assert D == 3
    N = B * P
    total = 3 * N
    if total % _LANES_PER_ROW != 0:
        raise ValueError("transition_mean_pallas requires B*P % 128 == 0; "
                         "use transition_mean() which falls back to pure JAX.")

    R = total // _LANES_PER_ROW
    x2d = prev_latent.reshape(R, _LANES_PER_ROW)   # contiguous reshape: no HBM relayout

    tile_r = _choose_tile_rows(R, max_tile_rows)
    grid = (pl.cdiv(R, tile_r),)                   # partial tail block handled by Pallas

    kernel = functools.partial(_transition_mean_kernel,
                               dt=float(dt), inv_m=1.0 / float(m))
    out = pl.pallas_call(
        kernel,
        out_shape=jax.ShapeDtypeStruct((R, _LANES_PER_ROW), x2d.dtype),
        grid=grid,
        in_specs=[pl.BlockSpec((tile_r, _LANES_PER_ROW), lambda i: (i, 0))],
        out_specs=pl.BlockSpec((tile_r, _LANES_PER_ROW), lambda i: (i, 0)),
        compiler_params=pltpu.CompilerParams(dimension_semantics=("parallel",)),
    )(x2d)

    return out.reshape(B, P, 3)                    # contiguous reshape: no HBM relayout


def _transition_mean_reference(prev_latent, *, m, dt):
    """Pure-JAX forward (same math / op order as the torch module)."""
    f = prev_latent[..., 0]
    x = prev_latent[..., 1]
    v = prev_latent[..., 2]
    return jnp.stack([f, x + dt * v, v + dt * (f * (1.0 / m))], axis=-1)


def transition_mean(prev_latent, *, m, dt):
    """Dispatch: Pallas kernel for large, 128-aligned particle counts; fused XLA otherwise."""
    B, P, _ = prev_latent.shape
    N = B * P
    if (N < _PALLAS_MIN_PARTICLES or N % 128 != 0
            or prev_latent.dtype != jnp.float32):
        return _transition_mean_reference(prev_latent, m=m, dt=dt)
    return transition_mean_pallas(prev_latent, m=m, dt=dt)


def transition_forward(prev_latent, *, m, dt, scale_force, scale_aux):
    """Returns the parameters of the MultivariateNormal the torch module builds.

    mean: (B, P, 3)
    cov:  (3, 3) constant diagonal.  It is deliberately NOT broadcast to
          (B, P, 3, 3): the covariance is batch/particle independent, and
          materializing the broadcast would write 3x more HBM than the mean.
    """
    mean = transition_mean(prev_latent, m=m, dt=dt)
    diag_vals = jnp.array(
        [dt ** 2 * scale_force ** 2, scale_aux ** 2, scale_aux ** 2],
        dtype=prev_latent.dtype,
    )
    cov = jnp.diag(diag_vals)
    # TODO(synk): torch.distributions.MultivariateNormal / aesmc BatchShapeMode
    # wrapping has no Pallas equivalent; return (mean, cov) parameters instead.
    return mean, cov


if __name__ == "__main__":
    # deterministic module parameters (from __init__ signature)
    m_par = 2.0
    dt = 0.1
    scale_force = 0.5
    scale_aux = 0.01

    key = jax.random.PRNGKey(0)
    k1, k2 = jax.random.split(key)

    # 1) Pallas path: batch=2, particles=1024 (B*P multiple of 128).
    B, P = 2, 1024
    prev_big = jax.random.normal(k1, (B, P, 3), dtype=jnp.float32)
    mean_big = jax.block_until_ready(transition_mean_pallas(prev_big, m=m_par, dt=dt))
    ref_big = _transition_mean_reference(prev_big, m=m_par, dt=dt)
    assert mean_big.shape == (B, P, 3)
    assert jnp.allclose(mean_big, ref_big, atol=1e-6, rtol=1e-6)

    # 2) Module-natural tiny shape goes through the full forward (auto-dispatches
    #    to the fused pure-JAX path, where kernel launch overhead would dominate).
    Bs, Ps = 2, 8
    prev_small = jax.random.normal(k2, (Bs, Ps, 3), dtype=jnp.float32)
    mean_s, cov3 = transition_forward(
        prev_small, m=m_par, dt=dt, scale_force=scale_force, scale_aux=scale_aux
    )
    mean_s = jax.block_until_ready(mean_s)
    cov3 = jax.block_until_ready(cov3)
    ref_s = _transition_mean_reference(prev_small, m=m_par, dt=dt)
    assert mean_s.shape == (Bs, Ps, 3) and cov3.shape == (3, 3)
    assert jnp.allclose(mean_s, ref_s, atol=1e-6, rtol=1e-6)
    expected_cov = jnp.diag(jnp.array(
        [dt ** 2 * scale_force ** 2, scale_aux ** 2, scale_aux ** 2], dtype=jnp.float32))
    assert jnp.allclose(cov3, expected_cov)

    print("KERNEL_OK")
</pallas_src>

<mosaic_0001>
module attributes {stable_mosaic.version = 11 : i64} {
  func.func @_transition_mean_kernel(%arg0: i32, %arg1: memref<8x384xf32, #tpu.memory_space<vmem>>, %arg2: memref<8x384xf32, #tpu.memory_space<vmem>>) attributes {dimension_semantics = [#tpu.dimension_semantics<parallel>], iteration_bounds = array<i64: 2>, scalar_prefetch = 0 : i64, scratch_operands = 0 : i64, tpu.core_type = #tpu.core_type<tc>, window_params = [{transform_indices = @transform_0, window_bounds = array<i64: 8, 384>}, {transform_indices = @transform_1, window_bounds = array<i64: 8, 384>}]} {
    %c0 = arith.constant 0 : index
    %c0_0 = arith.constant 0 : index
    %0 = vector.load %arg1[%c0, %c0_0] : memref<8x384xf32, #tpu.memory_space<vmem>>, vector<8x384xf32>
    %1 = tpu.iota {dimensions = array<i32: 1>} : vector<8x384xi32>
    %c3_i32 = arith.constant 3 : i32
    %c0_i32 = arith.constant 0 : i32
    %2 = arith.cmpi eq, %c3_i32, %c0_i32 : i32
    %c1_i32 = arith.constant 1 : i32
    %3 = arith.select %2, %c1_i32, %c3_i32 : i32
    %4 = vector.broadcast %3 : i32 to vector<8x384xi32>
    %5 = arith.remsi %1, %4 : vector<8x384xi32>
    %c0_i32_1 = arith.constant 0 : i32
    %6 = vector.broadcast %c0_i32_1 : i32 to vector<8x384xi32>
    %7 = arith.cmpi ne, %5, %6 : vector<8x384xi32>
    %c0_i32_2 = arith.constant 0 : i32
    %8 = vector.broadcast %c0_i32_2 : i32 to vector<8x384xi32>
    %9 = arith.cmpi slt, %5, %8 : vector<8x384xi32>
    %c0_i32_3 = arith.constant 0 : i32
    %10 = arith.cmpi slt, %3, %c0_i32_3 : i32
    %11 = vector.broadcast %10 : i1 to vector<8x384xi1>
    %12 = vector.broadcast %11 : vector<8x384xi1> to vector<8x384xi1>
    %13 = arith.xori %9, %12 : vector<8x384xi1>
    %14 = arith.andi %13, %7 : vector<8x384xi1>
    %15 = vector.broadcast %3 : i32 to vector<8x384xi32>
    %16 = arith.addi %5, %15 : vector<8x384xi32>
    %17 = arith.select %14, %16, %5 : vector<8x384xi1>, vector<8x384xi32>
    %18 = vector.extract_strided_slice %0 {offsets = [0, 1], sizes = [8, 383], strides = [1, 1]} : vector<8x384xf32> to vector<8x383xf32>
    %19 = vector.extract_strided_slice %0 {offsets = [0, 0], sizes = [8, 1], strides = [1, 1]} : vector<8x384xf32> to vector<8x1xf32>
    %20 = tpu.concatenate %18, %19 in 1 : vector<8x383xf32>, vector<8x1xf32> -> vector<8x384xf32>
    %21 = vector.extract_strided_slice %0 {offsets = [0, 382], sizes = [8, 2], strides = [1, 1]} : vector<8x384xf32> to vector<8x2xf32>
    %22 = vector.extract_strided_slice %0 {offsets = [0, 0], sizes = [8, 382], strides = [1, 1]} : vector<8x384xf32> to vector<8x382xf32>
    %23 = tpu.concatenate %21, %22 in 1 : vector<8x2xf32>, vector<8x382xf32> -> vector<8x384xf32>
    %c1_i32_4 = arith.constant 1 : i32
    %24 = vector.broadcast %c1_i32_4 : i32 to vector<8x384xi32>
    %25 = arith.cmpi eq, %17, %24 : vector<8x384xi32>
    %26 = arith.select %25, %20, %23 : vector<8x384xi1>, vector<8x384xf32>
    %c1_i32_5 = arith.constant 1 : i32
    %27 = vector.broadcast %c1_i32_5 : i32 to vector<8x384xi32>
    %28 = arith.cmpi eq, %17, %27 : vector<8x384xi32>
    %c2_i32 = arith.constant 2 : i32
    %29 = vector.broadcast %c2_i32 : i32 to vector<8x384xi32>
    %30 = arith.cmpi eq, %17, %29 : vector<8x384xi32>
    %cst = arith.constant 5.000000e-02 : f32
    %cst_6 = arith.constant 0.000000e+00 : f32
    %31 = vector.broadcast %cst : f32 to vector<8x384xf32>
    %32 = vector.broadcast %cst_6 : f32 to vector<8x384xf32>
    %33 = arith.select %30, %31, %32 : vector<8x384xi1>, vector<8x384xf32>
    %cst_7 = arith.constant 1.000000e-01 : f32
    %34 = vector.broadcast %cst_7 : f32 to vector<8x384xf32>
    %35 = arith.select %28, %34, %33 : vector<8x384xi1>, vector<8x384xf32>
    %36 = arith.mulf %35, %26 : vector<8x384xf32>
    %37 = arith.addf %0, %36 : vector<8x384xf32>
    %c0_8 = arith.constant 0 : index
    %c0_9 = arith.constant 0 : index
    %38 = vector.load %arg2[%c0_8, %c0_9] : memref<8x384xf32, #tpu.memory_space<vmem>>, vector<8x384xf32>
    tpu.vector_store %arg2[%c0_8, %c0_9], %37 {strides = array<i32>} : memref<8x384xf32, #tpu.memory_space<vmem>>, vector<8x384xf32>,
    return
  }
  func.func @transform_0(%arg0: i32) -> (i32, i32) {
    %c0_i32 = arith.constant 0 : i32
    %c0_i32_0 = arith.constant 0 : i32
    return %arg0, %c0_i32 : i32, i32
  }
  func.func @transform_1(%arg0: i32) -> (i32, i32) {
    %c0_i32 = arith.constant 0 : i32
    %c0_i32_0 = arith.constant 0 : i32
    return %arg0, %c0_i32 : i32, i32
  }
}

</mosaic_0001>

<bundles_post_ra>
// kernel: tpu_custom_call.1
= control target key start
LH: loop header
LB: loop body
LE: loop exit
PB: predicated region body
PF: predicated region fallthrough
CT: control target
= control target key end

     0   :  { %6 = vsyncpa [#allocation3], 0  ;;  %s685_s0 = inlined_call_operand.hbm [shape: f32[16,384], index: 0, kind: input, shape index: {}]   ;;  %s686_s1 = inlined_call_operand.hbm [shape: f32[16,384], index: 1, kind: output, shape index: {}]  }
   0x1   :  { %8 = vsyncpa [#allocation3 + $0x1], 0 }
   0x2   :  { %9 = vsyncpa [#allocation4], 0 }
   0x3   :  { %11 = vsyncpa [#allocation4 + $0x1], 0  ;;  %s504_s6 = smov 0   ;;  %s506_s7 = smov 0  }
   0x4   :  { %s508_s8 = smov 0   ;;  %s510_s9 = smov 0  }
   0x5 LB: > { %s525_s10 = sadd.s32 4294967295, %s487_s9   ;;  %s328_s11 = sadd.s32 4294967294, %s487_s9   ;;  %s487_s9 = sphi %s510_s9, %s702_s9   ;;  %s483_s8 = sphi %s508_s8, %s701_s8   ;;  %s479_s7 = sphi %s506_s7, %s700_s7   ;;  %s475_s6 = sphi %s504_s6, %s699_s6  }
   0x6   : > { %s529_s12 = sadd.s32 1, %s487_s9   ;;  %s24_s13 = sadd.s32 1, %s483_s8 }
   0x7   : > { %s21_s14 = ssub.s32 %s487_s9, %s529_s12  ;;  %p31_p0 = scmp.ne.s32.totalorder %s483_s8, %s479_s7 }
   0x8   : > { %p22_p1 = scmp.eq.s32.totalorder %s21_s14, 0  ;;  %p32_p2 = scmp.eq.s32.totalorder %s487_s9, 0 }
   0x9   : > { %p37_p3 = scmp.ne.s32.totalorder %s479_s7, %s475_s6  ;;  %p38_p4 = scmp.eq.s32.totalorder %s525_s10, 0 }
   0xa   : > { %s541_s15 = scalar_select %p22_p1, %s483_s8, %s24_s13  }
   0xb   : > { %p33_p5 = por %p32_p2, %p31_p0  ;;  %p543_p6 = por %p38_p4, %p37_p3 }
   0xc   : > { %p61_p7 = scmp.eq.s32.totalorder %s525_s10, 1  ;;  %p67_p8 = scmp.eq.s32.totalorder %s328_s11, 1 }
   0xd   : > { %s689_s16 = scalar_select %p543_p6, 1, 0 }
   0xe   : > { %p358_p10 = scmp.lt.s32.totalorder %s487_s9, 2  ;;  %p550_p11 = por %p61_p7, %p31_p0 }
   0xf   : > { %p554_p12 = por %p67_p8, %p37_p3  ;;  %s87_s19 = sand.u32 1, %s483_s8  }
  0x10   : > { %s690_s17 = scalar_select %p550_p11, 1, 0 }
  0x11   : > { %s691_s18 = scalar_select %p554_p12, 1, 0 }
  0x12   : > { %s337_s20 = smul.u32 384, %s487_s9  ;;  %p565_p13 = pnand %p358_p10, %p33_p5 }
  0x13   : > { %s336_s21 = smul.u32 24, %s87_s19  ;;  %s88_s28 = scalar_lea.sflag [#allocation3], %s87_s19 }
  0x14   : > { %s563_s24 = scalar_lea.hbm %s685_s0, %s337_s20  ;;  %p397_p3 = pneg %p565_p13 }
  0x15   : > { %s91_s26 = scalar_lea.vmem [#allocation2], %s336_s21  ;;  %s395_s29 = scalar_lea.hbm %s563_s24, 384 }
  0x16   : > { %s99_s27 = sshll.u32 %s91_s26, 4  ;;  %p396_p2 = scmp.ne.s32.totalorder %s563_s24, %s395_s29  ;;  %s100_s27 = int_to_ptr.vmem [resolvable:$true] %s99_s27 }
  0x17   : > { %s400_s3 = scalar_lea.hbm %s685_s0, 768  ;;  %p401_p5 = scmp.lt.s32.totalorder %s563_s24, %s685_s0 }
  0x18   : > { %p398_p4 = pnand %p397_p3, %p396_p2  ;;  %p402_p8 = scmp.lt.s32.totalorder %s400_s3, %s395_s29 }
  0x1a   : > { %p399_p7 = pneg %p398_p4  ;;  %p403_p10 = por %p402_p8, %p401_p5 }
  0x1c   : > { %p404_p9 = pnand %p403_p10, %p399_p7 }
  0x1e   : > { %407 = shalt.err (!%p404_p9)
}
  0x1f   : > { %s408_s11 = scalar_lea.vmem %s100_s27, 384  ;;  %s489_s13 = smov [#allocation2]  }
  0x20   : > { %p409_p0 = scmp.ne.s32.totalorder %s100_s27, %s408_s11  ;;  %s413_s14 = sshll.u32 %s489_s13, 4  ;;  %s414_s14 = int_to_ptr.vmem [resolvable:$false] %s413_s14 }
  0x21   : > { %s415_s19 = scalar_lea.vmem %s414_s14, 768  ;;  %p416_p2 = scmp.lt.s32.totalorder %s100_s27, %s414_s14 }
  0x22   : > { %p411_p1 = pnand %p409_p0, %p397_p3  ;;  %p417_p4 = scmp.lt.s32.totalorder %s415_s19, %s408_s11 }
  0x24   : > { %p412_p12 = pneg %p411_p1  ;;  %p418_p11 = por %p417_p4, %p416_p2 }
  0x26   : > { %p419_p6 = pnand %p418_p11, %p412_p12 }
  0x28   : > { %422 = shalt.err (!%p419_p6)
}
  0x29   : > { %353 = dma.hbm_to_vmem [thread:$0]  (!%p565_p13), %s563_s24, 384, %s100_s27, %s88_s28  }
  0x2a   : > { %p693_p9 = scmp.lt.s32.totalorder %s487_s9, 3  ;;  %p694_p7 = scmp.ge.s32.totalorder %s487_s9, 1 }
  0x2c   : > { %p105_p5 = pnand %p694_p7, %p693_p9 }
  0x2d   : > { %s590_s20 = sand.u32 (!%p105_p5), 1, %s479_s7   ;;  %p695_p6 = scmp.ne.s32.totalorder (!%p105_p5), %s689_s16, 0 }
  0x2e   : > { %108 = sbr.rel (%p105_p5) target bundleno = 196 (0xc4), region = 24  ;;  %s111_s22 = scalar_lea.sflag (!%p105_p5), [#allocation3], %s590_s20 }
  0x2f   : > { %s338_s21 = smul.u32 (!%p105_p5), 24, %s590_s20 }
  0x31   : > { %s114_s23 = scalar_lea.vmem (!%p105_p5), [#allocation2], %s338_s21 }
  0x33   : > { %466 = dma.done.wait (%p695_p6), %s111_s22, 384  }
  0x34   : > { %468 = vsyncadd (%p695_p6), %s111_s22, 4294966912  ;;  %v600_v0 = vld [vmem:[%s114_s23 + $0x10] sm:$0xff]  ;;  %v602_v1 = vld [vmem:[%s114_s23] sm:$0xff]  ;;  %s490_s24 = smov 127   ;;  %s491_s25 = smov 2   ;;  %v136_v3 = vlaneseq  ;;  %vm197_vm12 = vcmask 1039360  }
  0x35   : > { %195 = vrot.lane.b32.xlu1 %v600_v0, %s490_s24  ;;  %191 = vrot.lane.b32.xlu0 %v602_v1, %s490_s24  ;;  %v606_v2 = vld [vmem:[%s114_s23 + $0x8] sm:$0xff]  ;;  %v492_v32 = vmov 0.0   ;;  %s345_s16 = smul.u32 384, %s525_s10  ;;  %s132_s26 = scalar_lea.vmem [#allocation5], %s338_s21 }
  0x36   : > { %v137_v4 = vand.u32 127, %v136_v3  ;;  %s258_s27 = sshll.u32 %s132_s26, 4  ;;  %s244_s30 = scalar_lea.sflag [#allocation4], %s590_s20  ;;  %s644_s27 = int_to_ptr.vmem [resolvable:$true] %s258_s27 }
  0x37   : > { %s642_s29 = scalar_lea.hbm %s686_s1, %s345_s16  ;;  %s423_s2 = scalar_lea.vmem %s644_s27, 384 }
  0x38   : > { %v139_v5 = vadd.s32 256, %v137_v4  ;;  %v138_v6 = vadd.s32 128, %v137_v4  ;;  %v612_v7 = vmul.u32.u64.low 2863311531, %v137_v4  ;;  %v613_v8 = vmul.u32.u64.high 2863311531, %v137_v4, %v612_v7  ;;  %p424_p11 = scmp.ne.s32.totalorder %s644_s27, %s423_s2  ;;  %p696_p12 = scmp.ne.s32.totalorder %s690_s17, 0 }
  0x39   : > { %205 = vrot.lane.b32.xlu1 %v600_v0, %s491_s25  ;;  %193 = vrot.lane.b32.xlu0 %v606_v2, %s490_s24  ;;  %s493_s3 = smov [#allocation5]  }
  0x3a   : > { %v615_v9 = vmul.u32.u64.low 2863311531, %v139_v5  ;;  %v616_v10 = vmul.u32.u64.high 2863311531, %v139_v5, %v615_v9  ;;  %v618_v11 = vmul.u32.u64.low 2863311531, %v138_v6  ;;  %v619_v12 = vmul.u32.u64.high 2863311531, %v138_v6, %v618_v11  ;;  %p425_p13 = pnand %p424_p11, %p696_p12  ;;  %s427_s4 = sshll.u32 %s493_s3, 4  ;;  %s428_s4 = int_to_ptr.vmem [resolvable:$false] %s427_s4 }
  0x3b   : > { %v146_v13 = vshrl.u32 %v613_v8, 1  ;;  %s429_s5 = scalar_lea.vmem %s428_s4, 768  ;;  %p430_p1 = scmp.lt.s32.totalorder %s644_s27, %s428_s4 }
  0x3c   : > { %v168_v14 = vshrl.u32 %v616_v10, 1  ;;  %v157_v15 = vshrl.u32 %v619_v12, 1  ;;  %p426_p0 = pneg %p425_p13  ;;  %p431_p3 = scmp.lt.s32.totalorder %s429_s5, %s423_s2 }
  0x3d   : > { %210 = vrot.lane.b32.xlu1 %v606_v2, %s491_s25  ;;  %208 = vrot.lane.b32.xlu0 %v602_v1, %s491_s25  ;;  %v147_v16 = vmul.u32 3, %v146_v13 }
  0x3e   : > { %v169_v17 = vmul.u32 3, %v168_v14  ;;  %v158_v18 = vmul.u32 3, %v157_v15  ;;  %p432_p8 = por %p431_p3, %p430_p1 }
  0x3f   : > { %v148_v19 = vsub.s32 %v137_v4, %v147_v16 }
  0x40   : > { %v170_v20 = vsub.s32 %v139_v5, %v169_v17  ;;  %v159_v21 = vsub.s32 %v138_v6, %v158_v18  ;;  %p433_p10 = pnand %p432_p8, %p426_p0 }
  0x41   : > { %vm173_vm0 = vcmp.ne.s32.totalorder %v148_v19, 0  ;;  %vm176_vm1 = vcmp.lt.s32.totalorder %v148_v19, 0  ;;  %v182_v22 = vadd.s32 3, %v148_v19 }
  0x42   : > { %vm175_vm2 = vcmp.ne.s32.totalorder %v170_v20, 0  ;;  %vm178_vm3 = vcmp.lt.s32.totalorder %v170_v20, 0  ;;  %vm174_vm4 = vcmp.ne.s32.totalorder %v159_v21, 0  ;;  %vm177_vm5 = vcmp.lt.s32.totalorder %v159_v21, 0  ;;  %vm179_vm6 = vmand %vm176_vm1, %vm173_vm0 }
  0x43   : > { %vm181_vm7 = vmand %vm178_vm3, %vm175_vm2  ;;  %v184_v23 = vadd.s32 3, %v170_v20  ;;  %v183_v24 = vadd.s32 3, %v159_v21  ;;  %v185_v25 = vsel %vm179_vm6, %v182_v22, %v148_v19  ;;  %vm212_vm0 = vcmask 15360  }
  0x44   : > { %vm180_vm8 = vmand %vm177_vm5, %vm174_vm4  ;;  %vm225_vm9 = vcmp.eq.s32.totalorder %v185_v25, 2  ;;  %vm219_vm13 = vcmp.eq.s32.totalorder %v185_v25, 1 }
  0x45   : > { %v187_v26 = vsel %vm181_vm7, %v184_v23, %v170_v20  ;;  %v186_v27 = vsel %vm180_vm8, %v183_v24, %v159_v21  ;;  %v228_v33 = vsel %vm225_vm9, 0.05, %v492_v32 }
  0x46   : > { %vm227_vm10 = vcmp.eq.s32.totalorder %v187_v26, 2  ;;  %vm226_vm11 = vcmp.eq.s32.totalorder %v186_v27, 2  ;;  %vm221_vm14 = vcmp.eq.s32.totalorder %v187_v26, 1  ;;  %vm220_vm15 = vcmp.eq.s32.totalorder %v186_v27, 1 }
  0x47   : > { %v230_v34 = vsel %vm227_vm10, 0.05, %v492_v32  ;;  %v229_v35 = vsel %vm226_vm11, 0.05, %v492_v32  ;;  %v231_v36 = vsel %vm219_vm13, 0.1, %v228_v33 }
  0x48   : > { %v233_v39 = vsel %vm221_vm14, 0.1, %v230_v34  ;;  %v232_v41 = vsel %vm220_vm15, 0.1, %v229_v35 }
  0xa7   : > { %v196_v28 = vpop.permute.xlu1 %195  ;;  %v192_v29 = vpop.permute.xlu0 %191 }
  0xa8   : > { %v204_v37 = vsel %vm197_vm12, %v196_v28, %v192_v29 }
  0xab   : > { %v206_v30 = vpop.permute.xlu1 %205  ;;  %v194_v31 = vpop.permute.xlu0 %193 }
  0xac   : > { %v198_v38 = vsel %vm197_vm12, %v192_v29, %v194_v31  ;;  %v199_v43 = vsel %vm197_vm12, %v194_v31, %v196_v28 }
  0xaf   : > { %v211_v40 = vpop.permute.xlu1 %210  ;;  %v209_v42 = vpop.permute.xlu0 %208 }
  0xb0   : > { %v214_v44 = vsel %vm212_vm0, %v211_v40, %v206_v30  ;;  %v213_v45 = vsel %vm212_vm0, %v209_v42, %v211_v40  ;;  %v218_v46 = vsel %vm212_vm0, %v206_v30, %v209_v42 }
  0xb1   : > { %v224_v47 = vsel %vm221_vm14, %v204_v37, %v214_v44  ;;  %v222_v48 = vsel %vm219_vm13, %v198_v38, %v218_v46  ;;  %v223_v49 = vsel %vm220_vm15, %v199_v43, %v213_v45 }
  0xb2   : > { %v236_v50 = vmul.f32 %v233_v39, %v224_v47  ;;  %v234_v51 = vmul.f32 %v231_v36, %v222_v48  ;;  %v235_v52 = vmul.f32 %v232_v41, %v223_v49 }
  0xb4   : > { %v239_v53 = vadd.f32 %v236_v50, %v600_v0  ;;  %v237_v54 = vadd.f32 %v234_v51, %v602_v1  ;;  %v238_v55 = vadd.f32 %v235_v52, %v606_v2 }
  0xb6   : > { %242 = vst [vmem:[%s132_s26 + $0x10] sm:$0xff] %v239_v53  ;;  %240 = vst [vmem:[%s132_s26] sm:$0xff] %v237_v54 }
  0xb7   : > { %241 = vst [vmem:[%s132_s26 + $0x8] sm:$0xff] %v238_v55 }
  0xb8   : > { %436 = shalt.err (!%p433_p10)
}
  0xb9   : > { %s437_s11 = scalar_lea.hbm %s642_s29, 384  ;;  %s441_s19 = scalar_lea.hbm %s686_s1, 768 }
  0xba   : > { %p438_p2 = scmp.ne.s32.totalorder %s642_s29, %s437_s11  ;;  %p442_p7 = scmp.lt.s32.totalorder %s642_s29, %s686_s1 }
  0xbb   : > { %p443_p5 = scmp.lt.s32.totalorder %s441_s19, %s437_s11 }
  0xbc   : > { %p439_p4 = pnand %p438_p2, %p696_p12 }
  0xbd   : > { %p444_p6 = por %p443_p5, %p442_p7 }
  0xbe   : > { %p440_p9 = pneg %p439_p4 }
  0xc0   : > { %p445_p11 = pnand %p444_p6, %p440_p9 }
  0xc2   : > { %448 = shalt.err (!%p445_p11)
}
  0xc3   : > { %348 = dma.vmem_to_hbm [thread:$0]  (%p696_p12), %s644_s27, 384, %s642_s29, %s244_s30  }
  0xc4 PF: > { %s270_s22 = sand.u32 1, %s475_s6   ;;  %p697_p13 = scmp.ne.s32.totalorder %s691_s18, 0 }
  0xc5   : > { %p698_p0 = scmp.ge.s32.totalorder %s487_s9, 2  ;;  %s271_s23 = scalar_lea.sflag [#allocation4], %s270_s22 }
  0xc7   : > { %p355_p1 = pnand %p698_p0, %p697_p13 }
  0xc9   : > { %p356_p3 = pneg %p355_p1 }
  0xcb   : > { %470 = dma.done.wait (%p356_p3), %s271_s23, 384  }
  0xcc   : > { %472 = vsyncadd (%p356_p3), %s271_s23, 4294966912  ;;  %p14_p8 = scmp.ge.s32.totalorder %s529_s12, 4   ;;  %s699_s6 = smov %s479_s7 }
  0xcd   : > { %s700_s7 = smov %s483_s8  ;;  %s701_s8 = smov %s541_s15 }
  0xce   : > { %s702_s9 = smov %s529_s12  ;;  %16 = sbr.rel (!%p14_p8) target bundleno = 5 (0x5), region = 69 }
  0xd3   :  { %276 = vsyncpa [#allocation3], 1 }
  0xd4   :  { %278 = vsyncpa [#allocation3 + $0x1], 1 }
  0xd5   :  { %279 = vsyncpa [#allocation4], 1 }
  0xd6   :  { %281 = vsyncpa [#allocation4 + $0x1], 1 }

</bundles_post_ra>
